<compile_context>
chip_gen: v7x
topology: tpu7x:2x2x1
jax: 0.10.0
libtpu: 0.0.40
codegen_flags: <defaults>
</compile_context>

<pallas_src>
import functools

import jax
import jax.numpy as jnp
from jax import lax
from jax.experimental import pallas as pl
from jax.experimental.pallas import tpu as pltpu


def _cosine_sim_kernel(x_ref, y_ref, xsq_ref, ysq_ref, o_ref, *,
                       temp_sq, eps_temp_sq, sign):
    # x_ref  : (tm, H)  x row tile in the MXU feed dtype (bf16 by default)
    # y_ref  : (tn, H)  y row tile (NOT transposed; contraction on last dims)
    # xsq_ref: (tm, 1)  precomputed squared row norms of x (f32)
    # ysq_ref: (1, tn)  precomputed squared row norms of y (f32)
    # o_ref  : (tm, tn) f32
    dots = lax.dot_general(
        x_ref[...], y_ref[...],
        dimension_numbers=(((1,), (1,)), ((), ())),   # A · Bᵀ on the MXU
        preferred_element_type=jnp.float32,
    )
    # cos/temp == dots * sign(temp) * rsqrt(max(|x|^2*|y|^2*temp^2, (eps*temp)^2))
    denom_sq = jnp.maximum(xsq_ref[...] * ysq_ref[...] * temp_sq, eps_temp_sq)
    o_ref[...] = (dots * (sign * lax.rsqrt(denom_sq))).astype(o_ref.dtype)


def _round_up(v, m):
    return ((v + m - 1) // m) * m


def _choose_tile(padded_dim, align, cap):
    """Largest multiple of `align` that divides `padded_dim`, capped at `cap`."""
    t = min(cap, padded_dim)
    t -= t % align
    while t > align and padded_dim % t != 0:
        t -= align
    return max(t, align)


def _vmem_bytes(tm, tn, h, in_bytes):
    # double-buffered x/y input tiles + double-buffered f32 output tile + norm tiles
    return 2 * (tm + tn) * h * in_bytes + 2 * tm * tn * 4 + 4 * (tm + tn) * 4


_VMEM_TILE_BUDGET = 36 * 1024 * 1024   # conservative: also fits v7x's 64 MiB physical VMEM
_VMEM_LIMIT_BYTES = 48 * 1024 * 1024   # > v5e's 16 MiB default, < v7x physical


def similarity(x, y, temp, *, eps=1e-8, use_bf16_matmul=None):
    """Pallas equivalent of Similarity(temp)(x, y) for the SimCSE pairwise case.

    x: (Bx, 1, H) or (Bx, H);  y: (1, By, H) or (By, H)
    returns: (Bx, By) float32 cosine-similarity matrix scaled by 1/temp.

    use_bf16_matmul: None/True -> cast f32 inputs to bf16 for the MXU dot
        (norms and accumulation stay f32); False -> exact f32 matmul
        (slower multi-pass MXU emulation).
    """
    if x.ndim == 3:
        x = jnp.squeeze(x, axis=1)
    if y.ndim == 3:
        y = jnp.squeeze(y, axis=0)
    Bx, H = x.shape
    By, Hy = y.shape
    assert H == Hy, (H, Hy)

    in_dtype = jnp.result_type(x.dtype, y.dtype)
    if use_bf16_matmul is None:
        use_bf16_matmul = (in_dtype == jnp.float32)
    compute_dtype = (jnp.bfloat16
                     if (use_bf16_matmul and in_dtype == jnp.float32)
                     else in_dtype)
    in_bytes = jnp.dtype(compute_dtype).itemsize

    # Hoisted prep (tiny fused XLA ops): f32 squared row norms from the
    # original-precision inputs.  No transpose of y (kernel contracts last dims).
    xsq = jnp.sum(x.astype(jnp.float32) ** 2, axis=-1, keepdims=True)   # (Bx, 1)
    ysq = jnp.sum(y.astype(jnp.float32) ** 2, axis=-1)[None, :]         # (1, By)

    # Padding + tile selection: lane-dense output columns (multiple of 128),
    # sublane-packing-aligned rows (16 for bf16 / 8 for f32), VMEM-budgeted tiles.
    m_align = 16 if in_bytes == 2 else (32 if in_bytes == 1 else 8)
    n_align = 128
    Bxp = _round_up(Bx, m_align)
    Byp = _round_up(By, n_align)

    tm = _choose_tile(Bxp, m_align, 256)
    tn = _choose_tile(Byp, n_align, 256)
    while _vmem_bytes(tm, tn, H, in_bytes) > _VMEM_TILE_BUDGET:
        if tm >= tn and tm > m_align:
            tm = _choose_tile(Bxp, m_align, tm - m_align)
        elif tn > n_align:
            tn = _choose_tile(Byp, n_align, tn - n_align)
        elif tm > m_align:
            tm = _choose_tile(Bxp, m_align, tm - m_align)
        else:
            # TODO(synk): K-tile over H (third "arbitrary" grid axis + f32 acc
            # scratch) if minimal tiles still exceed VMEM for extreme H on v7x.
            break

    # If the grid collapses to a single step, split it so both v7x TensorCores
    # get work under ("parallel", "parallel") semantics (free ~2x on v7x).
    if (Bxp // tm) * (Byp // tn) == 1:
        if Byp // n_align >= 2:
            half = Byp // 2
            tn = half if half % n_align == 0 else n_align
        elif Bxp // m_align >= 2:
            half = Bxp // 2
            tm = half if half % m_align == 0 else m_align

    # Cast to the MXU feed dtype and zero-pad.  Padded rows/cols are harmless:
    # their dots are exactly 0 and the eps clamp keeps the denominator finite;
    # they are sliced off the output below.
    x_c = x.astype(compute_dtype)
    y_c = y.astype(compute_dtype)
    if Bxp > Bx:
        x_c = jnp.pad(x_c, ((0, Bxp - Bx), (0, 0)))
        xsq = jnp.pad(xsq, ((0, Bxp - Bx), (0, 0)))
    if Byp > By:
        y_c = jnp.pad(y_c, ((0, Byp - By), (0, 0)))
        ysq = jnp.pad(ysq, ((0, 0), (0, Byp - By)))

    temp = float(temp)
    eps = float(eps)
    kernel = functools.partial(
        _cosine_sim_kernel,
        temp_sq=temp * temp,
        eps_temp_sq=(eps * temp) ** 2,
        sign=1.0 if temp >= 0 else -1.0,
    )

    cost = pl.CostEstimate(
        flops=2 * Bxp * Byp * H,
        transcendentals=Bxp * Byp,
        bytes_accessed=(Bxp + Byp) * H * in_bytes + Bxp * Byp * 4 + 4 * (Bxp + Byp),
    )

    out = pl.pallas_call(
        kernel,
        out_shape=jax.ShapeDtypeStruct((Bxp, Byp), jnp.float32),
        grid_spec=pltpu.PrefetchScalarGridSpec(
            num_scalar_prefetch=0,
            grid=(Bxp // tm, Byp // tn),
            in_specs=[
                pl.BlockSpec((tm, H), lambda i, j: (i, 0)),   # x row tile
                pl.BlockSpec((tn, H), lambda i, j: (j, 0)),   # y row tile (A·Bᵀ)
                pl.BlockSpec((tm, 1), lambda i, j: (i, 0)),   # |x|^2 tile
                pl.BlockSpec((1, tn), lambda i, j: (0, j)),   # |y|^2 tile
            ],
            out_specs=pl.BlockSpec((tm, tn), lambda i, j: (i, j)),
        ),
        compiler_params=pltpu.CompilerParams(
            dimension_semantics=("parallel", "parallel"),
            vmem_limit_bytes=_VMEM_LIMIT_BYTES,
        ),
        cost_estimate=cost,
    )(x_c, y_c, xsq, ysq)

    if Bxp > Bx or Byp > By:
        out = out[:Bx, :By]
    return out


def _reference(x, y, temp, eps=1e-8):
    # Pure-JAX reference mimicking torch.nn.CosineSimilarity(dim=-1) + /temp
    x = jnp.squeeze(x, axis=1) if x.ndim == 3 else x
    y = jnp.squeeze(y, axis=0) if y.ndim == 3 else y
    x = x.astype(jnp.float32)
    y = y.astype(jnp.float32)
    dots = jnp.dot(x, y.T, precision=lax.Precision.HIGHEST)
    xn = jnp.linalg.norm(x, axis=-1, keepdims=True)
    yn = jnp.linalg.norm(y, axis=-1, keepdims=True)
    return dots / jnp.maximum(xn * yn.T, eps) / temp


if __name__ == "__main__":
    key = jax.random.PRNGKey(0)
    temp = 0.05
    k1x, k1y, k2x, k2y, k3x, k3y, k4x, k4y = jax.random.split(key, 8)

    # 1) Canonical SimCSE shape: x (B,1,H), y (1,B,H) -> (B,B). Default bf16-fed MXU.
    B, H = 16, 128
    x = jax.random.normal(k1x, (B, 1, H), dtype=jnp.float32)
    y = jax.random.normal(k1y, (1, B, H), dtype=jnp.float32)
    out = jax.block_until_ready(similarity(x, y, temp))
    ref = _reference(x, y, temp)
    assert out.shape == (B, B)
    assert jnp.allclose(out, ref, atol=7.5e-2, rtol=5e-2), "mismatch (bf16-fed default)"

    # 1b) Exact f32 MXU path (opt-in) — tight tolerance.
    out_f32 = jax.block_until_ready(similarity(x, y, temp, use_bf16_matmul=False))
    assert jnp.allclose(out_f32, ref, atol=1e-4, rtol=1e-4), "mismatch (exact f32)"

    # 2) Larger problem exercising the 2-D grid and the forced >=2-step split.
    Bx2, By2, H2 = 64, 256, 256
    x2 = jax.random.normal(k2x, (Bx2, H2), dtype=jnp.float32)
    y2 = jax.random.normal(k2y, (By2, H2), dtype=jnp.float32)
    out2 = jax.block_until_ready(similarity(x2, y2, temp))
    ref2 = _reference(x2, y2, temp)
    assert out2.shape == (Bx2, By2)
    assert jnp.allclose(out2, ref2, atol=7.5e-2, rtol=5e-2), "mismatch (2-D grid)"

    # 3) Native bf16 inputs (no extra cast; norms stay f32).
    B3, H3 = 32, 128
    x3 = jax.random.normal(k3x, (B3, H3), dtype=jnp.float32).astype(jnp.bfloat16)
    y3 = jax.random.normal(k3y, (B3, H3), dtype=jnp.float32).astype(jnp.bfloat16)
    out3 = jax.block_until_ready(similarity(x3, y3, temp))
    ref3 = _reference(x3, y3, temp)
    assert jnp.allclose(out3, ref3, atol=7.5e-2, rtol=5e-2), "mismatch (bf16 inputs)"

    # 4) Unaligned shapes -> zero-padding path + output slice.
    Bx4, By4, H4 = 10, 37, 96
    x4 = jax.random.normal(k4x, (Bx4, H4), dtype=jnp.float32)
    y4 = jax.random.normal(k4y, (By4, H4), dtype=jnp.float32)
    out4 = jax.block_until_ready(similarity(x4, y4, temp))
    ref4 = _reference(x4, y4, temp)
    assert out4.shape == (Bx4, By4)
    assert jnp.allclose(out4, ref4, atol=7.5e-2, rtol=5e-2), "mismatch (padded/unaligned)"

    print("KERNEL_OK")
</pallas_src>

<mosaic_0001>
module attributes {stable_mosaic.version = 11 : i64} {
  func.func @_cosine_sim_kernel(%arg0: i32, %arg1: i32, %arg2: memref<16x128xbf16, #tpu.memory_space<vmem>>, %arg3: memref<128x128xbf16, #tpu.memory_space<vmem>>, %arg4: memref<16x1xf32, #tpu.memory_space<vmem>>, %arg5: memref<1x128xf32, #tpu.memory_space<vmem>>, %arg6: memref<16x128xf32, #tpu.memory_space<vmem>>) attributes {dimension_semantics = [#tpu.dimension_semantics<parallel>, #tpu.dimension_semantics<parallel>], iteration_bounds = array<i64: 1, 1>, scalar_prefetch = 0 : i64, scratch_operands = 0 : i64, tpu.core_type = #tpu.core_type<tc>, window_params = [{transform_indices = @transform_0, window_bounds = array<i64: 16, 128>}, {transform_indices = @transform_1, window_bounds = array<i64: 128, 128>}, {transform_indices = @transform_2, window_bounds = array<i64: 16, 1>}, {transform_indices = @transform_3, window_bounds = array<i64: 1, 128>}, {transform_indices = @transform_4, window_bounds = array<i64: 16, 128>}]} {
    %c0 = arith.constant 0 : index
    %c0_0 = arith.constant 0 : index
    %0 = vector.load %arg2[%c0, %c0_0] : memref<16x128xbf16, #tpu.memory_space<vmem>>, vector<16x128xbf16>
    %c0_1 = arith.constant 0 : index
    %c0_2 = arith.constant 0 : index
    %1 = vector.load %arg3[%c0_1, %c0_2] : memref<128x128xbf16, #tpu.memory_space<vmem>>, vector<128x128xbf16>
    %cst = arith.constant dense<0.000000e+00> : vector<16x128xf32>
    %2 = tpu.matmul %0, %1, %cst {dimension_numbers = #tpu.dot_dimension_numbers<[1], [1], [0], [0], [0, 0, 1, 0], [], []>} : vector<16x128xbf16>, vector<128x128xbf16>, vector<16x128xf32> -> vector<16x128xf32>
    %c0_3 = arith.constant 0 : index
    %c0_4 = arith.constant 0 : index
    %3 = vector.load %arg4[%c0_3, %c0_4] : memref<16x1xf32, #tpu.memory_space<vmem>>, vector<16x1xf32>
    %c0_5 = arith.constant 0 : index
    %c0_6 = arith.constant 0 : index
    %4 = vector.load %arg5[%c0_5, %c0_6] : memref<1x128xf32, #tpu.memory_space<vmem>>, vector<1x128xf32>
    %5 = vector.broadcast %3 : vector<16x1xf32> to vector<16x128xf32>
    %6 = vector.broadcast %4 : vector<1x128xf32> to vector<16x128xf32>
    %7 = arith.mulf %5, %6 : vector<16x128xf32>
    %cst_7 = arith.constant 2.500000e-03 : f32
    %8 = vector.broadcast %cst_7 : f32 to vector<16x128xf32>
    %9 = arith.mulf %7, %8 : vector<16x128xf32>
    %cst_8 = arith.constant 2.500000e-19 : f32
    %10 = vector.broadcast %cst_8 : f32 to vector<16x128xf32>
    %11 = arith.maximumf %9, %10 : vector<16x128xf32>
    %12 = math.rsqrt %11 : vector<16x128xf32>
    %cst_9 = arith.constant 1.000000e+00 : f32
    %13 = vector.broadcast %cst_9 : f32 to vector<16x128xf32>
    %14 = arith.mulf %13, %12 : vector<16x128xf32>
    %15 = arith.mulf %2, %14 : vector<16x128xf32>
    %c0_10 = arith.constant 0 : index
    %c0_11 = arith.constant 0 : index
    %16 = vector.load %arg6[%c0_10, %c0_11] : memref<16x128xf32, #tpu.memory_space<vmem>>, vector<16x128xf32>
    tpu.vector_store %arg6[%c0_10, %c0_11], %15 {strides = array<i32>} : memref<16x128xf32, #tpu.memory_space<vmem>>, vector<16x128xf32>,
    return
  }
  func.func @transform_0(%arg0: i32, %arg1: i32) -> (i32, i32) {
    %c0_i32 = arith.constant 0 : i32
    %c0_i32_0 = arith.constant 0 : i32
    return %arg0, %c0_i32 : i32, i32
  }
  func.func @transform_1(%arg0: i32, %arg1: i32) -> (i32, i32) {
    %c0_i32 = arith.constant 0 : i32
    %c0_i32_0 = arith.constant 0 : i32
    return %arg1, %c0_i32 : i32, i32
  }
  func.func @transform_2(%arg0: i32, %arg1: i32) -> (i32, i32) {
    %c0_i32 = arith.constant 0 : i32
    %c0_i32_0 = arith.constant 0 : i32
    return %arg0, %c0_i32 : i32, i32
  }
  func.func @transform_3(%arg0: i32, %arg1: i32) -> (i32, i32) {
    %c0_i32 = arith.constant 0 : i32
    %c0_i32_0 = arith.constant 0 : i32
    return %c0_i32, %arg1 : i32, i32
  }
  func.func @transform_4(%arg0: i32, %arg1: i32) -> (i32, i32) {
    %c0_i32 = arith.constant 0 : i32
    return %arg0, %arg1 : i32, i32
  }
}

</mosaic_0001>

<bundles_post_ra>
// kernel: tpu_custom_call.1
= control target key start
LH: loop header
LB: loop body
LE: loop exit
PB: predicated region body
PF: predicated region fallthrough
CT: control target
= control target key end

     0   :  { %9 = vsyncpa [#allocation3], 0  ;;  %s374_s0 = inlined_call_operand.vmem [shape: bf16[16,128], index: 0, kind: input, shape index: {}]   ;;  %s375_s1 = inlined_call_operand.hbm [shape: bf16[128,128], index: 1, kind: input, shape index: {}]   ;;  %s376_s2 = inlined_call_operand.vmem [shape: f32[16,1], index: 2, kind: input, shape index: {}]   ;;  %s377_s3 = inlined_call_operand.vmem [shape: f32[1,128], index: 3, kind: input, shape index: {}]   ;;  %s378_s4 = inlined_call_operand.hbm [shape: f32[16,128], index: 4, kind: output, shape index: {}]  }
   0x1   :  { %10 = vsyncpa [#allocation4], 0  ;;  %s304_s15 = smov [#allocation2]   ;;  %s256_s19 = scalar_lea.hbm %s375_s1, 1024 }
   0x2   :  { %s18_s16 = sshll.u32 %s304_s15, 4  ;;  %p257_p0 = scmp.ne.s32.totalorder %s375_s1, %s256_s19  ;;  %s19_s16 = int_to_ptr.vmem [resolvable:$true] %s18_s16 }
   0x3   :  { %p260_p1 = scmp.lt.u32.totalorder %s256_s19, %s375_s1 }
   0x5   :  { %p262_p2 = pnand %p260_p1, %p257_p0 }
   0x7   :  { %265 = shalt.err (!%p262_p2)
}
   0x8   :  { %s266_s24 = scalar_lea.vmem %s19_s16, 1024  ;;  %p271_p4 = scmp.lt.s32.totalorder %s19_s16, %s19_s16 }
   0x9   :  { %p267_p3 = scmp.ne.s32.totalorder %s19_s16, %s266_s24  ;;  %p272_p5 = scmp.lt.s32.totalorder %s266_s24, %s266_s24 }
   0xb   :  { %p273_p6 = por %p272_p5, %p271_p4 }
   0xd   :  { %p274_p7 = pnand %p273_p6, %p267_p3 }
   0xf   :  { %277 = shalt.err (!%p274_p7)
}
  0x10   :  { %s305_s25 = smov 64   ;;  %s306_s26 = smov 4  }
  0x11   :  { %24 = dma.hbm_to_vmem [thread:$0]  %s375_s1, 1024, %s19_s16, [#allocation3], %s305_s25, %s305_s25, %s306_s26  }
  0x12   :  { %300 = dma.done.wait [#allocation3], 1024  }
  0x13   :  { %301 = vsyncadd [#allocation3], 4294966272  ;;  %v307_v0 = vmov 0.0   ;;  %vm308_vm0 = vmmov 0   ;;  %v309_v1 = vmov 0   ;;  %v243_v2 = vld [vmem:[#allocation2] sm:$0xff]  }
  0x14   :  { %213 = vmatprep.subr.bf16.mxu0 %v307_v0  ;;  %229 = vmatprep.mubr.msk.bf16.mxu0 %vm308_vm0, %v307_v0  ;;  %v244_v3 = vld [vmem:[#allocation2 + $0x8] sm:$0xff]   ;;  %v146_v4 = vld [vmem:[%s376_s2] sm:$0xff]  ;;  %v245_v6 = vld [vmem:[#allocation2 + $0x10] sm:$0xff]   ;;  %s310_s9 = smov [#allocation5]  }
  0x15   :  { %242 = vset.pattern.permute.xlu0 %v309_v1  ;;  %214 = vmatpush3.bf16.xpose.msra.mxu0 %v243_v2  ;;  %v147_v5 = vld [vmem:[%s376_s2 + $0x8] sm:$0xff]  ;;  %v246_v7 = vld [vmem:[#allocation2 + $0x18] sm:$0xff]   ;;  %v247_v8 = vld [vmem:[#allocation2 + $0x20] sm:$0xff]   ;;  %s182_s10 = sshll.u32 %s310_s9, 4  ;;  %s183_s10 = int_to_ptr.vmem [resolvable:$true] %s182_s10 }
  0x16   :  { %215 = vmatprep.subr.bf16.mxu0 %v307_v0  ;;  %151 = vperm.xlu0 %242, %v146_v4   ;;  %v248_v9 = vld [vmem:[#allocation2 + $0x28] sm:$0xff]   ;;  %v249_v10 = vld [vmem:[#allocation2 + $0x30] sm:$0xff]   ;;  %v250_v11 = vld [vmem:[#allocation2 + $0x38] sm:$0xff]   ;;  %p283_p9 = scmp.lt.s32.totalorder %s183_s10, %s183_s10 }
  0x17   :  { %v251_v12 = vld [vmem:[%s374_s0] sm:$0xff]   ;;  %s278_s0 = scalar_lea.vmem %s183_s10, 256 }
  0x18   :  { %v203_v14 = vld [vmem:[%s377_s3] ss:$0 sm:$0xff]  ;;  %p279_p8 = scmp.ne.s32.totalorder %s183_s10, %s278_s0  ;;  %p284_p10 = scmp.lt.s32.totalorder %s278_s0, %s278_s0 }
  0x1a   :  { %156 = vperm.xlu0 %242, %v147_v5   ;;  %p285_p11 = por %p284_p10, %p283_p9 }
  0x1c   :  { %p286_p12 = pnand %p285_p11, %p279_p8 }
  0x1d   :  { %216 = vmatpush3.bf16.xpose.msra.mxu0 %v244_v3 }
  0x1e   :  { %217 = vmatprep.subr.bf16.mxu0 %v307_v0 }
  0x25   :  { %218 = vmatpush3.bf16.xpose.msra.mxu0 %v245_v6 }
  0x26   :  { %219 = vmatprep.subr.bf16.mxu0 %v307_v0 }
  0x2d   :  { %220 = vmatpush3.bf16.xpose.msra.mxu0 %v246_v7 }
  0x2e   :  { %221 = vmatprep.subr.bf16.mxu0 %v307_v0 }
  0x35   :  { %222 = vmatpush3.bf16.xpose.msra.mxu0 %v247_v8 }
  0x36   :  { %223 = vmatprep.subr.bf16.mxu0 %v307_v0 }
  0x3d   :  { %224 = vmatpush3.bf16.xpose.msra.mxu0 %v248_v9 }
  0x3e   :  { %225 = vmatprep.subr.bf16.mxu0 %v307_v0 }
  0x45   :  { %226 = vmatpush3.bf16.xpose.msra.mxu0 %v249_v10 }
  0x46   :  { %227 = vmatprep.subr.bf16.mxu0 %v307_v0 }
  0x4d   :  { %228 = vmatpush3.bf16.xpose.msra.mxu0 %v250_v11 }
  0x54   :  { %230 = vmatmul.mubr.bf16.vlgmr.msra.gmra.mrb[0].mxu0 %v251_v12 }
  0x95   :  { %v152_v13 = vpop.permute.xlu0 %151 }
  0x96   :  { %v165_v16 = vmul.f32 %v203_v14, %v152_v13 }
  0x98   :  { %v167_v18 = vmul.f32 0.0025, %v165_v16 }
  0x99   :  { %v157_v15 = vpop.permute.xlu0 %156 }
  0x9a   :  { %v166_v17 = vmul.f32 %v203_v14, %v157_v15  ;;  %v169_v20 = vmax.f32 %v167_v18, 2.5e-19 }
  0x9c   :  { %v168_v19 = vmul.f32 0.0025, %v166_v17  ;;  %252 = vrsqrt.f32 %v169_v20 }
  0x9e   :  { %v170_v21 = vmax.f32 %v168_v19, 2.5e-19 }
  0xa0   :  { %254 = vrsqrt.f32 %v170_v21 }
  0xa6   :  { %v253_v22 = vpop.eup %252 }
  0xaa   :  { %v255_v26 = vpop.eup %254 }
 0x127   :  { %v139_v23 = vpop.f32.mrb[0].mxu0 }
 0x128   :  { %v173_v24 = vmul.f32 %v253_v22, %v139_v23  ;;  %v231_v25 = vpop.f32.mrb[1].mxu0 }
 0x129   :  { %v142_v27 = vpop.f32.mrb[2].mxu0 }
 0x12a   :  { %175 = vst [vmem:[#allocation5] sm:$0xff] %v173_v24  ;;  %v174_v28 = vmul.f32 %v255_v26, %v142_v27  ;;  %v232_v29 = vpop.f32.mrb[3].mxu0 }
 0x12c   :  { %176 = vst [vmem:[#allocation5 + $0x8] sm:$0xff] %v174_v28 }
 0x12d   :  { %289 = shalt.err (!%p286_p12)
}
 0x12e   :  { %s290_s12 = scalar_lea.hbm %s378_s4, 256 }
 0x12f   :  { %p291_p13 = scmp.ne.s32.totalorder %s378_s4, %s290_s12  ;;  %p294_p0 = scmp.lt.u32.totalorder %s290_s12, %s378_s4 }
 0x131   :  { %p296_p1 = pnand %p294_p0, %p291_p13 }
 0x133   :  { %299 = shalt.err (!%p296_p1)
}
 0x134   :  { %s311_s17 = smov 128   ;;  %s312_s18 = smov 8  }
 0x135   :  { %188 = dma.vmem_to_hbm [thread:$0]  %s183_s10, 256, %s378_s4, [#allocation4], %s311_s17, %s311_s17, %s312_s18  }
 0x136   :  { %302 = dma.done.wait [#allocation4], 256  }
 0x137   :  { %303 = vsyncadd [#allocation4], 4294967040 }
 0x138   :  { %192 = vsyncpa [#allocation3], 1 }
 0x139   :  { %193 = vsyncpa [#allocation4], 1 }

</bundles_post_ra>
